<compile_context>
chip_gen: v6e
topology: v6e:2x2x1
jax: 0.10.0
libtpu: 0.0.40
codegen_flags: <defaults>
</compile_context>

<pallas_src>
import functools
import math

import jax
import jax.numpy as jnp
from jax.experimental import pallas as pl
from jax.experimental.pallas import tpu as pltpu

EPS = 1e-5


def _round_up(x, m):
    return (x + m - 1) // m * m


def _vmem_limit_bytes():
    """Generation-aware scoped-VMEM limit (v5e/v6e: 128 MiB phys, v7x: 64 MiB)."""
    try:
        cap = int(pltpu.get_tpu_info().vmem_capacity_bytes)
    except Exception:
        cap = 64 * 1024 * 1024
    return (cap * 3) // 4


# ----------------------------------------------------------------------------
# Kernel 1: batch-norm statistics (independent per-chunk partials, parallel grid)
# ----------------------------------------------------------------------------
def bn_partial_kernel(x_ref, psum_ref, psq_ref):
    xv = x_ref[...].astype(jnp.float32)
    psum_ref[0] = jnp.sum(xv, axis=0, keepdims=True)
    psq_ref[0] = jnp.sum(xv * xv, axis=0, keepdims=True)


def bn_stats(x_flat, *, tm=2048, vmem_limit=None):
    """Training-mode BN statistics over rows of (M, C): mean, 1/sqrt(var+eps).

    Per-chunk partial sums are computed in Pallas (lane-dense blocks, ~1 MiB),
    then merged in JAX with a Chan / parallel-variance combine, which avoids the
    catastrophic E[x^2]-mean^2 cancellation over the whole batch and any long
    in-kernel accumulation chain.
    """
    M, C = x_flat.shape
    tm = _round_up(min(tm, _round_up(M, 8)), 8)
    Mp = _round_up(M, tm)
    n_chunks = Mp // tm
    # Zero rows contribute nothing to the partial sums -> padding is exact; the
    # per-chunk real row counts are used in the combine below.
    xp = jnp.pad(x_flat, ((0, Mp - M), (0, 0)))

    if vmem_limit is None:
        vmem_limit = _vmem_limit_bytes()

    psum, psq = pl.pallas_call(
        bn_partial_kernel,
        out_shape=(
            jax.ShapeDtypeStruct((n_chunks, 1, C), jnp.float32),
            jax.ShapeDtypeStruct((n_chunks, 1, C), jnp.float32),
        ),
        grid_spec=pltpu.PrefetchScalarGridSpec(
            num_scalar_prefetch=0,
            grid=(n_chunks,),
            in_specs=[pl.BlockSpec((tm, C), lambda i: (i, 0))],
            out_specs=[
                pl.BlockSpec((1, 1, C), lambda i: (i, 0, 0)),
                pl.BlockSpec((1, 1, C), lambda i: (i, 0, 0)),
            ],
        ),
        compiler_params=pltpu.CompilerParams(
            dimension_semantics=("parallel",),
            vmem_limit_bytes=vmem_limit,
        ),
        cost_estimate=pl.CostEstimate(
            flops=int(3 * Mp * C),
            transcendentals=0,
            bytes_accessed=int(Mp * C * 4 + 2 * n_chunks * C * 4),
        ),
    )(xp)

    # Chan / parallel-variance combine of the per-chunk partials.
    s = psum[:, 0, :]                      # (n_chunks, C)
    sq = psq[:, 0, :]
    n_i = jnp.clip(jnp.float32(M) - jnp.arange(n_chunks, dtype=jnp.float32) * tm,
                   0.0, float(tm))[:, None]
    safe_n = jnp.maximum(n_i, 1.0)
    mu_i = s / safe_n
    m2_i = jnp.maximum(sq - n_i * mu_i * mu_i, 0.0)
    n_tot = jnp.float32(M)
    mean = jnp.sum(s, axis=0, keepdims=True) / n_tot
    m2 = (jnp.sum(m2_i, axis=0, keepdims=True)
          + jnp.sum(n_i * (mu_i - mean) ** 2, axis=0, keepdims=True))
    var = jnp.maximum(m2 / n_tot, 0.0)     # biased variance (BN normalization)
    invstd = jax.lax.rsqrt(var + jnp.float32(EPS))
    return mean, invstd


# ----------------------------------------------------------------------------
# Kernel 2: fused 3x3 conv (gamma & beta together, kw folded into K) + BN affine
# ----------------------------------------------------------------------------
def spade_kernel(y3_ref, w_ref, b_ref, x_ref, mean_ref, invstd_ref, o_ref, *,
                 th, w_img, coutp):
    # grid = (batch, row-tile). y3_ref holds the whole kw-expanded, spatially
    # padded image of this batch element (resident across the row-tile axis),
    # flattened to (rows_total, Kp) so the three kh-taps are plain row slices.
    j = pl.program_id(1)
    rows = th * w_img                       # multiple of 8 by construction
    base = pl.multiple_of(j * rows, rows)

    def tap(kh):
        ys = y3_ref[pl.ds(base + kh * w_img, rows), :]          # (rows, Kp) bf16
        return jnp.dot(ys, w_ref[kh], preferred_element_type=jnp.float32)

    # Bias folded into the first tap's epilogue (no separate full VPU pass).
    acc = tap(0) + b_ref[...]
    acc = acc + tap(1)
    acc = acc + tap(2)

    gamma = acc[:, :coutp]                  # lane split on a 128-multiple: free
    beta = acc[:, coutp:]

    xn = (x_ref[...].astype(jnp.float32) - mean_ref[...]) * invstd_ref[...]
    o_ref[...] = (gamma * xn + beta).astype(o_ref.dtype)


def _choose_th(H, W, coutp, kp, budget_bytes, row_target=2048):
    """Row-tile height th such that (th*W) % 8 == 0 and VMEM fits the budget."""
    g = 8 // math.gcd(W, 8)                 # smallest th with (th*W) % 8 == 0
    th_cap = max(g, (row_target // max(W, 1)) // g * g)
    th_cap = min(th_cap, _round_up(H, g))

    def vmem_est(th):
        hp = _round_up(H, th)
        y_res = 2 * (hp + 2) * W * kp * 2            # resident y slab, bf16, 2 bufs
        w_res = 2 * 3 * kp * (2 * coutp) * 2         # conv weights, bf16, 2 bufs
        tiles = th * W * (coutp * 4 * 2              # x tile (f32, double buffered)
                          + coutp * 4 * 2            # out tile (f32, double buffered)
                          + 2 * coutp * 4)           # gamma/beta f32 accumulator
        return y_res + w_res + tiles

    th = th_cap
    while th > g and vmem_est(th) > budget_bytes:
        th -= g
    return max(th, g)


def spade_fused(y3_flat, w_taps, b_cat, x_flat, mean, invstd, *, batch, hp,
                width, th, vmem_limit):
    rows_total, kp = y3_flat.shape[1], y3_flat.shape[2]
    coutp = x_flat.shape[1]
    np_ = 2 * coutp
    nj = hp // th
    rows = th * width

    kernel = functools.partial(spade_kernel, th=th, w_img=width, coutp=coutp)
    flops = int(2 * batch * hp * width * (3 * kp) * np_ + 6 * batch * hp * width * coutp)
    bytes_accessed = int(batch * rows_total * kp * 2
                         + 2 * batch * hp * width * coutp * 4
                         + 3 * kp * np_ * 2 + 4 * coutp * 4)

    return pl.pallas_call(
        kernel,
        out_shape=jax.ShapeDtypeStruct(x_flat.shape, x_flat.dtype),
        grid_spec=pltpu.PrefetchScalarGridSpec(
            num_scalar_prefetch=0,
            grid=(batch, nj),
            in_specs=[
                # whole kw-expanded y image of batch b; block index is constant
                # over j, so with the "arbitrary" inner axis it is DMA'd once
                # per batch element (no per-tile re-fetch, no HBM im2col).
                pl.BlockSpec((None, rows_total, kp), lambda b, j: (b, 0, 0)),
                pl.BlockSpec((3, kp, np_), lambda b, j: (0, 0, 0)),
                pl.BlockSpec((1, np_), lambda b, j: (0, 0)),
                pl.BlockSpec((rows, coutp), lambda b, j: (b * nj + j, 0)),
                pl.BlockSpec((1, coutp), lambda b, j: (0, 0)),
                pl.BlockSpec((1, coutp), lambda b, j: (0, 0)),
            ],
            out_specs=pl.BlockSpec((rows, coutp), lambda b, j: (b * nj + j, 0)),
        ),
        compiler_params=pltpu.CompilerParams(
            dimension_semantics=("parallel", "arbitrary"),
            vmem_limit_bytes=vmem_limit,
        ),
        cost_estimate=pl.CostEstimate(flops=flops, transcendentals=0,
                                      bytes_accessed=bytes_accessed),
    )(y3_flat, w_taps, b_cat, x_flat, mean, invstd)


# ----------------------------------------------------------------------------
# Glue: NCHW <-> lane-dense layouts, kw expansion, weight packing & padding
# ----------------------------------------------------------------------------
def spade_forward(x, y, params, *, conv_dtype=jnp.bfloat16):
    """x: (B, Cout, H, W), y: (B, Cin, H, W) in NCHW, like the PyTorch module."""
    B, Cout, H, W = x.shape
    Cin = y.shape[1]

    coutp = _round_up(Cout, 128)            # lane-dense out / gamma / beta
    kp = _round_up(3 * Cin, 128)            # lane-dense matmul K (3 kw-taps fused)
    np_ = 2 * coutp

    vmem_limit = _vmem_limit_bytes()
    th = _choose_th(H, W, coutp, kp, budget_bytes=(vmem_limit * 4) // 5)
    hp = _round_up(H, th)
    nj = hp // th

    # ---- x: channels on the lane axis, padded to coutp ----
    x_nhwc = jnp.pad(jnp.transpose(x, (0, 2, 3, 1)),
                     ((0, 0), (0, 0), (0, 0), (0, coutp - Cout)))
    xs_flat = x_nhwc.reshape(B * H * W, coutp)          # stats: real rows only
    if hp > H:
        xm_flat = jnp.pad(x_nhwc, ((0, 0), (0, hp - H), (0, 0), (0, 0))
                          ).reshape(B * hp * W, coutp)
    else:
        xm_flat = xs_flat

    # ---- y: spatial pad, fuse the 3 kw-taps along channels, pad K to 128 ----
    y_nhwc = jnp.transpose(y, (0, 2, 3, 1))
    y_pad = jnp.pad(y_nhwc, ((0, 0), (1, 1 + hp - H), (1, 1), (0, 0)))
    y3 = jnp.concatenate([y_pad[:, :, 0:W, :],
                          y_pad[:, :, 1:W + 1, :],
                          y_pad[:, :, 2:W + 2, :]], axis=-1)   # (B, hp+2, W, 3*Cin)
    y3 = jnp.pad(y3, ((0, 0), (0, 0), (0, 0), (0, kp - 3 * Cin))).astype(conv_dtype)
    y3_flat = y3.reshape(B, (hp + 2) * W, kp)

    # ---- weights: per-kh (Kp, 2*coutp) slabs; gamma/beta fused on the N axis ----
    def pack(w, b):
        wt = jnp.transpose(w, (2, 3, 1, 0)).reshape(3, 3 * Cin, Cout)  # [kh, kw*Cin+c, co]
        wt = jnp.pad(wt, ((0, 0), (0, 0), (0, coutp - Cout)))
        bp = jnp.pad(b, (0, coutp - Cout))
        return wt, bp

    wtg, bpg = pack(params["wg"], params["bg"])
    wtb, bpb = pack(params["wb"], params["bb"])
    w_taps = jnp.concatenate([wtg, wtb], axis=-1)                      # (3, 3*Cin, np_)
    w_taps = jnp.pad(w_taps, ((0, 0), (0, kp - 3 * Cin), (0, 0))).astype(conv_dtype)
    b_cat = jnp.concatenate([bpg, bpb]).reshape(1, np_).astype(jnp.float32)

    # ---- BN statistics (Pallas partials + Chan combine) ----
    mean, invstd = bn_stats(xs_flat, vmem_limit=vmem_limit)

    out_flat = spade_fused(y3_flat, w_taps, b_cat, xm_flat, mean, invstd,
                           batch=B, hp=hp, width=W, th=th, vmem_limit=vmem_limit)

    out = out_flat.reshape(B, hp, W, coutp)[:, :H, :, :Cout]
    return jnp.transpose(out, (0, 3, 1, 2))


# ----------------------------------------------------------------------------
# Pure-JAX references for verification
# ----------------------------------------------------------------------------
def spade_reference(x, y, params, *, conv_dtype=None):
    wg, wb = params["wg"], params["wb"]
    y_ = y
    if conv_dtype is not None:   # apply the same input rounding as the kernel
        y_ = y.astype(conv_dtype).astype(jnp.float32)
        wg = wg.astype(conv_dtype).astype(jnp.float32)
        wb = wb.astype(conv_dtype).astype(jnp.float32)

    def conv(inp, w, b):
        out = jax.lax.conv_general_dilated(
            inp, w, window_strides=(1, 1), padding=((1, 1), (1, 1)),
            dimension_numbers=("NCHW", "OIHW", "NCHW"),
            preferred_element_type=jnp.float32,
            precision=jax.lax.Precision.HIGHEST)
        return out + b[None, :, None, None]

    gamma = conv(y_, wg, params["bg"])
    beta = conv(y_, wb, params["bb"])
    mean = jnp.mean(x, axis=(0, 2, 3), keepdims=True)
    var = jnp.mean((x - mean) ** 2, axis=(0, 2, 3), keepdims=True)
    xn = (x - mean) * jax.lax.rsqrt(var + EPS)
    return gamma * xn + beta


if __name__ == "__main__":
    B, Cin, Cout, H, W = 2, 6, 8, 16, 16

    key = jax.random.PRNGKey(0)
    k1, k2, k3, k4, k5, k6 = jax.random.split(key, 6)

    x = jax.random.normal(k1, (B, Cout, H, W), dtype=jnp.float32)
    y = jax.random.normal(k2, (B, Cin, H, W), dtype=jnp.float32)

    fan_in = Cin * 3 * 3
    bound = 1.0 / (fan_in ** 0.5)
    params = {
        "wg": jax.random.uniform(k3, (Cout, Cin, 3, 3), jnp.float32, -bound, bound),
        "bg": jax.random.uniform(k4, (Cout,), jnp.float32, -bound, bound),
        "wb": jax.random.uniform(k5, (Cout, Cin, 3, 3), jnp.float32, -bound, bound),
        "bb": jax.random.uniform(k6, (Cout,), jnp.float32, -bound, bound),
    }

    out = jax.block_until_ready(spade_forward(x, y, params))
    assert out.shape == (B, Cout, H, W)

    # Strict check: reference with the same bf16 rounding of the conv operands.
    ref_strict = spade_reference(x, y, params, conv_dtype=jnp.bfloat16)
    err_strict = float(jnp.max(jnp.abs(out - ref_strict)))
    assert err_strict < 2e-3, err_strict

    # Loose sanity check against the pure-f32 module (difference bounded by the
    # bf16 rounding of the conv inputs/weights).
    ref_f32 = spade_reference(x, y, params)
    err_f32 = float(jnp.max(jnp.abs(out - ref_f32)))
    assert err_f32 < 1e-1, err_f32

    print("KERNEL_OK")
</pallas_src>

<mosaic_0001>
module attributes {stable_mosaic.version = 11 : i64} {
  func.func @bn_partial_kernel(%arg0: i32, %arg1: memref<512x128xf32, #tpu.memory_space<vmem>>, %arg2: memref<1x1x128xf32, #tpu.memory_space<vmem>>, %arg3: memref<1x1x128xf32, #tpu.memory_space<vmem>>) attributes {dimension_semantics = [#tpu.dimension_semantics<parallel>], iteration_bounds = array<i64: 1>, scalar_prefetch = 0 : i64, scratch_operands = 0 : i64, tpu.core_type = #tpu.core_type<tc>, window_params = [{transform_indices = @transform_0, window_bounds = array<i64: 512, 128>}, {transform_indices = @transform_1, window_bounds = array<i64: 1, 1, 128>}, {transform_indices = @transform_2, window_bounds = array<i64: 1, 1, 128>}]} {
    %c0 = arith.constant 0 : index
    %c0_0 = arith.constant 0 : index
    %0 = vector.load %arg1[%c0, %c0_0] : memref<512x128xf32, #tpu.memory_space<vmem>>, vector<512x128xf32>
    %cst = arith.constant dense<0.000000e+00> : vector<128xf32>
    %1 = vector.multi_reduction <add>, %0, %cst [0] : vector<512x128xf32> to vector<128xf32>
    %2 = vector.shape_cast %1 : vector<128xf32> to vector<1x128xf32>
    %c0_1 = arith.constant 0 : index
    %c0_2 = arith.constant 0 : index
    %c0_3 = arith.constant 0 : index
    %3 = vector.load %arg2[%c0_1, %c0_2, %c0_3] : memref<1x1x128xf32, #tpu.memory_space<vmem>>, vector<1x1x128xf32>
    %4 = vector.shape_cast %3 : vector<1x1x128xf32> to vector<1x128xf32>
    %5 = vector.shape_cast %2 : vector<1x128xf32> to vector<1x1x128xf32>
    tpu.vector_store %arg2[%c0_1, %c0_2, %c0_3], %5 {strides = array<i32>} : memref<1x1x128xf32, #tpu.memory_space<vmem>>, vector<1x1x128xf32>,
    %6 = arith.mulf %0, %0 : vector<512x128xf32>
    %cst_4 = arith.constant dense<0.000000e+00> : vector<128xf32>
    %7 = vector.multi_reduction <add>, %6, %cst_4 [0] : vector<512x128xf32> to vector<128xf32>
    %8 = vector.shape_cast %7 : vector<128xf32> to vector<1x128xf32>
    %c0_5 = arith.constant 0 : index
    %c0_6 = arith.constant 0 : index
    %c0_7 = arith.constant 0 : index
    %9 = vector.load %arg3[%c0_5, %c0_6, %c0_7] : memref<1x1x128xf32, #tpu.memory_space<vmem>>, vector<1x1x128xf32>
    %10 = vector.shape_cast %9 : vector<1x1x128xf32> to vector<1x128xf32>
    %11 = vector.shape_cast %8 : vector<1x128xf32> to vector<1x1x128xf32>
    tpu.vector_store %arg3[%c0_5, %c0_6, %c0_7], %11 {strides = array<i32>} : memref<1x1x128xf32, #tpu.memory_space<vmem>>, vector<1x1x128xf32>,
    return
  }
  func.func @transform_0(%arg0: i32) -> (i32, i32) {
    %c0_i32 = arith.constant 0 : i32
    %c0_i32_0 = arith.constant 0 : i32
    return %arg0, %c0_i32 : i32, i32
  }
  func.func @transform_1(%arg0: i32) -> (i32, i32, i32) {
    %c0_i32 = arith.constant 0 : i32
    %c0_i32_0 = arith.constant 0 : i32
    %c0_i32_1 = arith.constant 0 : i32
    return %arg0, %c0_i32, %c0_i32_0 : i32, i32, i32
  }
  func.func @transform_2(%arg0: i32) -> (i32, i32, i32) {
    %c0_i32 = arith.constant 0 : i32
    %c0_i32_0 = arith.constant 0 : i32
    %c0_i32_1 = arith.constant 0 : i32
    return %arg0, %c0_i32, %c0_i32_0 : i32, i32, i32
  }
}

</mosaic_0001>

<bundles_post_ra>
// kernel: tpu_custom_call.1
= control target key start
LH: loop header
LB: loop body
LE: loop exit
PB: predicated region body
PF: predicated region fallthrough
CT: control target
= control target key end

     0   :  { %8 = vsyncpa [#allocation3], 0  ;;  %s423_s0 = inlined_call_operand.hbm [shape: f32[512,128], index: 0, kind: input, shape index: {}]   ;;  %s424_s1 = inlined_call_operand.hbm [shape: f32[1,1,128], index: 1, kind: output, shape index: {0}]   ;;  %s425_s2 = inlined_call_operand.hbm [shape: f32[1,1,128], index: 2, kind: output, shape index: {1}]  }
   0x1   :  { %9 = vsyncpa [#allocation4], 0 }
   0x2   :  { %10 = vsyncpa [#allocation7], 0  ;;  %s394_s9 = smov [#allocation2]  }
   0x3   :  { %s16_s10 = sshll.u32 %s394_s9, 4  ;;  %s17_s10 = int_to_ptr.vmem [resolvable:$true] %s16_s10 }
   0x4   :  { %s336_s11 = scalar_lea.vmem %s17_s10, 8192  ;;  %p341_p1 = scmp.lt.s32.totalorder %s17_s10, %s17_s10 }
   0x5   :  { %p337_p0 = scmp.ne.s32.totalorder %s17_s10, %s336_s11  ;;  %p342_p2 = scmp.lt.s32.totalorder %s336_s11, %s336_s11 }
   0x7   :  { %p343_p3 = por %p342_p2, %p341_p1 }
   0x9   :  { %p344_p4 = pnand %p343_p3, %p337_p0 }
   0xb   :  { %347 = shalt.err (!%p344_p4)
}
   0xc   :  { %s395_s12 = smov 128   ;;  %s396_s13 = smov 8  }
   0xd   :  { %22 = dma.hbm_to_vmem [thread:$0]  %s423_s0, 8192, %s17_s10, [#allocation3], %s395_s12, %s395_s12, %s396_s13  }
   0xe   :  { %388 = dma.done.wait [#allocation3], 8192  }
   0xf   :  { %389 = vsyncadd [#allocation3], 4294959104  ;;  %v26_v0 = vld [vmem:[#allocation2] sm:$0xff]  ;;  %v27_v1 = vld [vmem:[#allocation2 + $0x8] sm:$0xff]  ;;  %s397_s0 = smov [#allocation5]   ;;  %s398_s17 = smov [#allocation6]  }
  0x10   :  { %v28_v2 = vld [vmem:[#allocation2 + $0x10] sm:$0xff]  ;;  %v29_v3 = vld [vmem:[#allocation2 + $0x18] sm:$0xff]  ;;  %v90_v4 = vadd.f32 %v27_v1, %v26_v0  ;;  %v160_v5 = vmul.f32 %v26_v0, %v26_v0  ;;  %v161_v6 = vmul.f32 %v27_v1, %v27_v1  ;;  %v30_v8 = vld [vmem:[#allocation2 + $0x20] sm:$0xff]  ;;  %s300_s16 = sshll.u32 %s397_s0, 4  ;;  %s310_s18 = sshll.u32 %s398_s17, 4  ;;  %s301_s16 = int_to_ptr.vmem [resolvable:$true] %s300_s16  ;;  %s311_s18 = int_to_ptr.vmem [resolvable:$true] %s310_s18 }
  0x11   :  { %v162_v7 = vmul.f32 %v28_v2, %v28_v2  ;;  %v163_v10 = vmul.f32 %v29_v3, %v29_v3  ;;  %v31_v12 = vld [vmem:[#allocation2 + $0x28] sm:$0xff]  ;;  %v164_v14 = vmul.f32 %v30_v8, %v30_v8  ;;  %v32_v16 = vld [vmem:[#allocation2 + $0x30] sm:$0xff]  ;;  %v33_v20 = vld [vmem:[#allocation2 + $0x38] sm:$0xff]  ;;  %s348_s19 = scalar_lea.vmem %s301_s16, 16  ;;  %s352_s20 = scalar_lea.vmem %s301_s16, 32 }
  0x12   :  { %v91_v9 = vadd.f32 %v90_v4, %v28_v2  ;;  %v224_v11 = vadd.f32 %v161_v6, %v160_v5  ;;  %v165_v18 = vmul.f32 %v31_v12, %v31_v12  ;;  %v166_v22 = vmul.f32 %v32_v16, %v32_v16  ;;  %v34_v24 = vld [vmem:[#allocation2 + $0x40] sm:$0xff]  ;;  %v35_v28 = vld [vmem:[#allocation2 + $0x48] sm:$0xff]  ;;  %v36_v32 = vld [vmem:[#allocation2 + $0x50] sm:$0xff]  ;;  %p349_p5 = scmp.ne.s32.totalorder %s301_s16, %s348_s19  ;;  %p353_p6 = scmp.lt.s32.totalorder %s301_s16, %s301_s16 }
  0x13   :  { %v167_v26 = vmul.f32 %v33_v20, %v33_v20  ;;  %v168_v30 = vmul.f32 %v34_v24, %v34_v24  ;;  %v169_v34 = vmul.f32 %v35_v28, %v35_v28  ;;  %v37_v36 = vld [vmem:[#allocation2 + $0x58] sm:$0xff]  ;;  %v170_v38 = vmul.f32 %v36_v32, %v36_v32  ;;  %v38_v40 = vld [vmem:[#allocation2 + $0x60] sm:$0xff]  ;;  %v39_v44 = vld [vmem:[#allocation2 + $0x68] sm:$0xff]  ;;  %p354_p7 = scmp.lt.s32.totalorder %s352_s20, %s348_s19 }
  0x14   :  { %v92_v13 = vadd.f32 %v91_v9, %v29_v3  ;;  %v225_v15 = vadd.f32 %v224_v11, %v162_v7  ;;  %v171_v42 = vmul.f32 %v37_v36, %v37_v36  ;;  %v172_v46 = vmul.f32 %v38_v40, %v38_v40  ;;  %v40_v48 = vld [vmem:[#allocation2 + $0x70] sm:$0xff]  ;;  %v41_v52 = vld [vmem:[#allocation2 + $0x78] sm:$0xff]  ;;  %v42_v56 = vld [vmem:[#allocation2 + $0x80] sm:$0xff] }
  0x15   :  { %v173_v50 = vmul.f32 %v39_v44, %v39_v44  ;;  %v174_v54 = vmul.f32 %v40_v48, %v40_v48  ;;  %v175_v58 = vmul.f32 %v41_v52, %v41_v52  ;;  %v43_v60 = vld [vmem:[#allocation2 + $0x88] sm:$0xff]  ;;  %v176_v62 = vmul.f32 %v42_v56, %v42_v56  ;;  %v44_v0 = vld [vmem:[#allocation2 + $0x90] sm:$0xff]  ;;  %v45_v4 = vld [vmem:[#allocation2 + $0x98] sm:$0xff]  ;;  %p355_p8 = por %p354_p7, %p353_p6 }
  0x16   :  { %v93_v17 = vadd.f32 %v92_v13, %v30_v8  ;;  %v226_v19 = vadd.f32 %v225_v15, %v163_v10  ;;  %v177_v2 = vmul.f32 %v43_v60, %v43_v60  ;;  %v178_v6 = vmul.f32 %v44_v0, %v44_v0  ;;  %v46_v8 = vld [vmem:[#allocation2 + $0xa0] sm:$0xff] }
  0x17   :  { %v179_v10 = vmul.f32 %v45_v4, %v45_v4  ;;  %p356_p9 = pnand %p355_p8, %p349_p5 }
  0x18   :  { %v94_v21 = vadd.f32 %v93_v17, %v31_v12  ;;  %v227_v23 = vadd.f32 %v226_v19, %v164_v14  ;;  %v47_v12 = vld [vmem:[#allocation2 + $0xa8] sm:$0xff]  ;;  %v180_v14 = vmul.f32 %v46_v8, %v46_v8 }
  0x1a   :  { %v95_v25 = vadd.f32 %v94_v21, %v32_v16  ;;  %v228_v27 = vadd.f32 %v227_v23, %v165_v18  ;;  %v48_v16 = vld [vmem:[#allocation2 + $0xb0] sm:$0xff]  ;;  %v181_v18 = vmul.f32 %v47_v12, %v47_v12 }
  0x1c   :  { %v96_v29 = vadd.f32 %v95_v25, %v33_v20  ;;  %v229_v31 = vadd.f32 %v228_v27, %v166_v22  ;;  %v49_v20 = vld [vmem:[#allocation2 + $0xb8] sm:$0xff]  ;;  %v182_v22 = vmul.f32 %v48_v16, %v48_v16 }
  0x1e   :  { %v97_v33 = vadd.f32 %v96_v29, %v34_v24  ;;  %v230_v35 = vadd.f32 %v229_v31, %v167_v26  ;;  %v50_v24 = vld [vmem:[#allocation2 + $0xc0] sm:$0xff]  ;;  %v183_v26 = vmul.f32 %v49_v20, %v49_v20 }
  0x20   :  { %v98_v37 = vadd.f32 %v97_v33, %v35_v28  ;;  %v231_v39 = vadd.f32 %v230_v35, %v168_v30  ;;  %v51_v28 = vld [vmem:[#allocation2 + $0xc8] sm:$0xff]  ;;  %v184_v30 = vmul.f32 %v50_v24, %v50_v24 }
  0x22   :  { %v99_v41 = vadd.f32 %v98_v37, %v36_v32  ;;  %v232_v43 = vadd.f32 %v231_v39, %v169_v34  ;;  %v52_v32 = vld [vmem:[#allocation2 + $0xd0] sm:$0xff]  ;;  %v185_v34 = vmul.f32 %v51_v28, %v51_v28 }
  0x24   :  { %v100_v45 = vadd.f32 %v99_v41, %v37_v36  ;;  %v233_v47 = vadd.f32 %v232_v43, %v170_v38  ;;  %v53_v36 = vld [vmem:[#allocation2 + $0xd8] sm:$0xff]  ;;  %v186_v38 = vmul.f32 %v52_v32, %v52_v32 }
  0x26   :  { %v101_v49 = vadd.f32 %v100_v45, %v38_v40  ;;  %v234_v51 = vadd.f32 %v233_v47, %v171_v42  ;;  %v54_v40 = vld [vmem:[#allocation2 + $0xe0] sm:$0xff]  ;;  %v187_v42 = vmul.f32 %v53_v36, %v53_v36 }
  0x28   :  { %v102_v53 = vadd.f32 %v101_v49, %v39_v44  ;;  %v235_v55 = vadd.f32 %v234_v51, %v172_v46  ;;  %v55_v44 = vld [vmem:[#allocation2 + $0xe8] sm:$0xff]  ;;  %v188_v46 = vmul.f32 %v54_v40, %v54_v40 }
  0x2a   :  { %v103_v57 = vadd.f32 %v102_v53, %v40_v48  ;;  %v236_v59 = vadd.f32 %v235_v55, %v173_v50  ;;  %v56_v48 = vld [vmem:[#allocation2 + $0xf0] sm:$0xff]  ;;  %v189_v50 = vmul.f32 %v55_v44, %v55_v44 }
  0x2c   :  { %v104_v61 = vadd.f32 %v103_v57, %v41_v52  ;;  %v237_v63 = vadd.f32 %v236_v59, %v174_v54  ;;  %v57_v52 = vld [vmem:[#allocation2 + $0xf8] sm:$0xff]  ;;  %v190_v54 = vmul.f32 %v56_v48, %v56_v48 }
  0x2e   :  { %v105_v1 = vadd.f32 %v104_v61, %v42_v56  ;;  %v238_v3 = vadd.f32 %v237_v63, %v175_v58  ;;  %v58_v56 = vld [vmem:[#allocation2 + $0x100] sm:$0xff]  ;;  %v191_v58 = vmul.f32 %v57_v52, %v57_v52 }
  0x30   :  { %v106_v5 = vadd.f32 %v105_v1, %v43_v60  ;;  %v239_v7 = vadd.f32 %v238_v3, %v176_v62  ;;  %v59_v60 = vld [vmem:[#allocation2 + $0x108] sm:$0xff]  ;;  %v192_v62 = vmul.f32 %v58_v56, %v58_v56 }
  0x32   :  { %v107_v9 = vadd.f32 %v106_v5, %v44_v0  ;;  %v240_v11 = vadd.f32 %v239_v7, %v177_v2  ;;  %v60_v0 = vld [vmem:[#allocation2 + $0x110] sm:$0xff]  ;;  %v193_v2 = vmul.f32 %v59_v60, %v59_v60 }
  0x34   :  { %v108_v13 = vadd.f32 %v107_v9, %v45_v4  ;;  %v241_v15 = vadd.f32 %v240_v11, %v178_v6  ;;  %v61_v4 = vld [vmem:[#allocation2 + $0x118] sm:$0xff]  ;;  %v194_v6 = vmul.f32 %v60_v0, %v60_v0 }
  0x36   :  { %v109_v17 = vadd.f32 %v108_v13, %v46_v8  ;;  %v242_v19 = vadd.f32 %v241_v15, %v179_v10  ;;  %v62_v8 = vld [vmem:[#allocation2 + $0x120] sm:$0xff]  ;;  %v195_v10 = vmul.f32 %v61_v4, %v61_v4 }
  0x38   :  { %v110_v21 = vadd.f32 %v109_v17, %v47_v12  ;;  %v243_v23 = vadd.f32 %v242_v19, %v180_v14  ;;  %v63_v12 = vld [vmem:[#allocation2 + $0x128] sm:$0xff]  ;;  %v196_v14 = vmul.f32 %v62_v8, %v62_v8 }
  0x3a   :  { %v111_v25 = vadd.f32 %v110_v21, %v48_v16  ;;  %v244_v27 = vadd.f32 %v243_v23, %v181_v18  ;;  %v64_v16 = vld [vmem:[#allocation2 + $0x130] sm:$0xff]  ;;  %v197_v18 = vmul.f32 %v63_v12, %v63_v12 }
  0x3c   :  { %v112_v29 = vadd.f32 %v111_v25, %v49_v20  ;;  %v245_v31 = vadd.f32 %v244_v27, %v182_v22  ;;  %v65_v20 = vld [vmem:[#allocation2 + $0x138] sm:$0xff]  ;;  %v198_v22 = vmul.f32 %v64_v16, %v64_v16 }
  0x3e   :  { %v113_v33 = vadd.f32 %v112_v29, %v50_v24  ;;  %v246_v35 = vadd.f32 %v245_v31, %v183_v26  ;;  %v66_v24 = vld [vmem:[#allocation2 + $0x140] sm:$0xff]  ;;  %v199_v26 = vmul.f32 %v65_v20, %v65_v20 }
  0x40   :  { %v114_v37 = vadd.f32 %v113_v33, %v51_v28  ;;  %v247_v39 = vadd.f32 %v246_v35, %v184_v30  ;;  %v67_v28 = vld [vmem:[#allocation2 + $0x148] sm:$0xff]  ;;  %v200_v30 = vmul.f32 %v66_v24, %v66_v24 }
  0x42   :  { %v115_v41 = vadd.f32 %v114_v37, %v52_v32  ;;  %v248_v43 = vadd.f32 %v247_v39, %v185_v34  ;;  %v68_v32 = vld [vmem:[#allocation2 + $0x150] sm:$0xff]  ;;  %v201_v34 = vmul.f32 %v67_v28, %v67_v28 }
  0x44   :  { %v116_v45 = vadd.f32 %v115_v41, %v53_v36  ;;  %v249_v47 = vadd.f32 %v248_v43, %v186_v38  ;;  %v69_v36 = vld [vmem:[#allocation2 + $0x158] sm:$0xff]  ;;  %v202_v38 = vmul.f32 %v68_v32, %v68_v32 }
  0x46   :  { %v117_v49 = vadd.f32 %v116_v45, %v54_v40  ;;  %v250_v51 = vadd.f32 %v249_v47, %v187_v42  ;;  %v70_v40 = vld [vmem:[#allocation2 + $0x160] sm:$0xff]  ;;  %v203_v42 = vmul.f32 %v69_v36, %v69_v36 }
  0x48   :  { %v118_v53 = vadd.f32 %v117_v49, %v55_v44  ;;  %v251_v55 = vadd.f32 %v250_v51, %v188_v46  ;;  %v71_v44 = vld [vmem:[#allocation2 + $0x168] sm:$0xff]  ;;  %v204_v46 = vmul.f32 %v70_v40, %v70_v40 }
  0x4a   :  { %v119_v57 = vadd.f32 %v118_v53, %v56_v48  ;;  %v252_v59 = vadd.f32 %v251_v55, %v189_v50  ;;  %v72_v48 = vld [vmem:[#allocation2 + $0x170] sm:$0xff]  ;;  %v205_v50 = vmul.f32 %v71_v44, %v71_v44 }
  0x4c   :  { %v120_v61 = vadd.f32 %v119_v57, %v57_v52  ;;  %v253_v63 = vadd.f32 %v252_v59, %v190_v54  ;;  %v73_v52 = vld [vmem:[#allocation2 + $0x178] sm:$0xff]  ;;  %v206_v54 = vmul.f32 %v72_v48, %v72_v48 }
  0x4e   :  { %v121_v1 = vadd.f32 %v120_v61, %v58_v56  ;;  %v254_v3 = vadd.f32 %v253_v63, %v191_v58  ;;  %v74_v56 = vld [vmem:[#allocation2 + $0x180] sm:$0xff]  ;;  %v207_v58 = vmul.f32 %v73_v52, %v73_v52 }
  0x50   :  { %v122_v5 = vadd.f32 %v121_v1, %v59_v60  ;;  %v255_v7 = vadd.f32 %v254_v3, %v192_v62  ;;  %v75_v60 = vld [vmem:[#allocation2 + $0x188] sm:$0xff]  ;;  %v208_v62 = vmul.f32 %v74_v56, %v74_v56 }
  0x52   :  { %v123_v9 = vadd.f32 %v122_v5, %v60_v0  ;;  %v256_v11 = vadd.f32 %v255_v7, %v193_v2  ;;  %v76_v0 = vld [vmem:[#allocation2 + $0x190] sm:$0xff]  ;;  %v209_v2 = vmul.f32 %v75_v60, %v75_v60 }
  0x54   :  { %v124_v13 = vadd.f32 %v123_v9, %v61_v4  ;;  %v257_v15 = vadd.f32 %v256_v11, %v194_v6  ;;  %v77_v4 = vld [vmem:[#allocation2 + $0x198] sm:$0xff]  ;;  %v210_v6 = vmul.f32 %v76_v0, %v76_v0 }
  0x56   :  { %v125_v17 = vadd.f32 %v124_v13, %v62_v8  ;;  %v258_v19 = vadd.f32 %v257_v15, %v195_v10  ;;  %v78_v8 = vld [vmem:[#allocation2 + $0x1a0] sm:$0xff]  ;;  %v211_v10 = vmul.f32 %v77_v4, %v77_v4 }
  0x58   :  { %v126_v21 = vadd.f32 %v125_v17, %v63_v12  ;;  %v259_v23 = vadd.f32 %v258_v19, %v196_v14  ;;  %v79_v12 = vld [vmem:[#allocation2 + $0x1a8] sm:$0xff]  ;;  %v212_v14 = vmul.f32 %v78_v8, %v78_v8 }
  0x5a   :  { %v127_v25 = vadd.f32 %v126_v21, %v64_v16  ;;  %v260_v27 = vadd.f32 %v259_v23, %v197_v18  ;;  %v80_v16 = vld [vmem:[#allocation2 + $0x1b0] sm:$0xff]  ;;  %v213_v18 = vmul.f32 %v79_v12, %v79_v12 }
  0x5c   :  { %v128_v29 = vadd.f32 %v127_v25, %v65_v20  ;;  %v261_v31 = vadd.f32 %v260_v27, %v198_v22  ;;  %v81_v20 = vld [vmem:[#allocation2 + $0x1b8] sm:$0xff]  ;;  %v214_v22 = vmul.f32 %v80_v16, %v80_v16 }
  0x5e   :  { %v129_v33 = vadd.f32 %v128_v29, %v66_v24  ;;  %v262_v35 = vadd.f32 %v261_v31, %v199_v26  ;;  %v82_v24 = vld [vmem:[#allocation2 + $0x1c0] sm:$0xff]  ;;  %v215_v26 = vmul.f32 %v81_v20, %v81_v20 }
  0x60   :  { %v130_v37 = vadd.f32 %v129_v33, %v67_v28  ;;  %v263_v39 = vadd.f32 %v262_v35, %v200_v30  ;;  %v83_v28 = vld [vmem:[#allocation2 + $0x1c8] sm:$0xff]  ;;  %v216_v30 = vmul.f32 %v82_v24, %v82_v24 }
  0x62   :  { %v131_v41 = vadd.f32 %v130_v37, %v68_v32  ;;  %v264_v43 = vadd.f32 %v263_v39, %v201_v34  ;;  %v84_v32 = vld [vmem:[#allocation2 + $0x1d0] sm:$0xff]  ;;  %v217_v34 = vmul.f32 %v83_v28, %v83_v28 }
  0x64   :  { %v132_v45 = vadd.f32 %v131_v41, %v69_v36  ;;  %v265_v47 = vadd.f32 %v264_v43, %v202_v38  ;;  %v85_v36 = vld [vmem:[#allocation2 + $0x1d8] sm:$0xff]  ;;  %v218_v38 = vmul.f32 %v84_v32, %v84_v32 }
  0x66   :  { %v133_v49 = vadd.f32 %v132_v45, %v70_v40  ;;  %v266_v51 = vadd.f32 %v265_v47, %v203_v42  ;;  %v86_v40 = vld [vmem:[#allocation2 + $0x1e0] sm:$0xff]  ;;  %v219_v42 = vmul.f32 %v85_v36, %v85_v36 }
  0x68   :  { %v134_v53 = vadd.f32 %v133_v49, %v71_v44  ;;  %v267_v55 = vadd.f32 %v266_v51, %v204_v46  ;;  %v87_v44 = vld [vmem:[#allocation2 + $0x1e8] sm:$0xff]  ;;  %v220_v46 = vmul.f32 %v86_v40, %v86_v40 }
  0x6a   :  { %v135_v57 = vadd.f32 %v134_v53, %v72_v48  ;;  %v268_v59 = vadd.f32 %v267_v55, %v205_v50  ;;  %v88_v48 = vld [vmem:[#allocation2 + $0x1f0] sm:$0xff]  ;;  %v221_v50 = vmul.f32 %v87_v44, %v87_v44 }
  0x6c   :  { %v136_v61 = vadd.f32 %v135_v57, %v73_v52  ;;  %v269_v63 = vadd.f32 %v268_v59, %v206_v54  ;;  %v89_v52 = vld [vmem:[#allocation2 + $0x1f8] sm:$0xff]  ;;  %v222_v54 = vmul.f32 %v88_v48, %v88_v48 }
  0x6d   :  { %v223_v57 = vmul.f32 %v89_v52, %v89_v52 }
  0x6e   :  { %v137_v1 = vadd.f32 %v136_v61, %v74_v56  ;;  %v270_v3 = vadd.f32 %v269_v63, %v207_v58 }
  0x70   :  { %v138_v5 = vadd.f32 %v137_v1, %v75_v60  ;;  %v271_v7 = vadd.f32 %v270_v3, %v208_v62 }
  0x72   :  { %v139_v9 = vadd.f32 %v138_v5, %v76_v0  ;;  %v272_v11 = vadd.f32 %v271_v7, %v209_v2 }
  0x74   :  { %v140_v13 = vadd.f32 %v139_v9, %v77_v4  ;;  %v273_v15 = vadd.f32 %v272_v11, %v210_v6 }
  0x76   :  { %v141_v17 = vadd.f32 %v140_v13, %v78_v8  ;;  %v274_v19 = vadd.f32 %v273_v15, %v211_v10 }
  0x78   :  { %v142_v21 = vadd.f32 %v141_v17, %v79_v12  ;;  %v275_v23 = vadd.f32 %v274_v19, %v212_v14 }
  0x7a   :  { %v143_v25 = vadd.f32 %v142_v21, %v80_v16  ;;  %v276_v27 = vadd.f32 %v275_v23, %v213_v18 }
  0x7c   :  { %v144_v29 = vadd.f32 %v143_v25, %v81_v20  ;;  %v277_v31 = vadd.f32 %v276_v27, %v214_v22 }
  0x7e   :  { %v145_v33 = vadd.f32 %v144_v29, %v82_v24  ;;  %v278_v35 = vadd.f32 %v277_v31, %v215_v26 }
  0x80   :  { %v146_v37 = vadd.f32 %v145_v33, %v83_v28  ;;  %v279_v39 = vadd.f32 %v278_v35, %v216_v30 }
  0x82   :  { %v147_v41 = vadd.f32 %v146_v37, %v84_v32  ;;  %v280_v43 = vadd.f32 %v279_v39, %v217_v34 }
  0x84   :  { %v148_v45 = vadd.f32 %v147_v41, %v85_v36  ;;  %v281_v47 = vadd.f32 %v280_v43, %v218_v38 }
  0x86   :  { %v149_v49 = vadd.f32 %v148_v45, %v86_v40  ;;  %v282_v51 = vadd.f32 %v281_v47, %v219_v42 }
  0x88   :  { %v150_v53 = vadd.f32 %v149_v49, %v87_v44  ;;  %v283_v55 = vadd.f32 %v282_v51, %v220_v46 }
  0x8a   :  { %v151_v56 = vadd.f32 %v150_v53, %v88_v48  ;;  %v284_v58 = vadd.f32 %v283_v55, %v221_v50 }
  0x8c   :  { %v152_v59 = vadd.f32 %v151_v56, %v89_v52  ;;  %v285_v60 = vadd.f32 %v284_v58, %v222_v54 }
  0x8e   :  { %v153_v61 = vrot.slane %v152_v59, 4  ;;  %v286_v62 = vadd.f32 %v285_v60, %v223_v57 }
  0x90   :  { %v154_v63 = vadd.f32 %v153_v61, %v152_v59  ;;  %v287_v0 = vrot.slane %v286_v62, 4 }
  0x92   :  { %v155_v1 = vrot.slane %v154_v63, 2  ;;  %v288_v2 = vadd.f32 %v287_v0, %v286_v62 }
  0x94   :  { %v156_v3 = vadd.f32 %v155_v1, %v154_v63  ;;  %v289_v4 = vrot.slane %v288_v2, 2 }
  0x96   :  { %v157_v5 = vrot.slane %v156_v3, 1  ;;  %v290_v6 = vadd.f32 %v289_v4, %v288_v2 }
  0x98   :  { %v158_v7 = vadd.f32 %v157_v5, %v156_v3  ;;  %v291_v8 = vrot.slane %v290_v6, 1 }
  0x9a   :  { %159 = vst [vmem:[#allocation5] sm:$0x1] %v158_v7  ;;  %v292_v9 = vadd.f32 %v291_v8, %v290_v6 }
  0x9b   :  { %359 = shalt.err (!%p356_p9)
}
  0x9c   :  { %303 = dma.vmem_to_hbm [thread:$0]  %s301_s16, 16, %s424_s1, [#allocation4]   ;;  %293 = vst [vmem:[#allocation6] sm:$0x1] %v292_v9 }
  0x9d   :  { %s368_s23 = scalar_lea.vmem %s311_s18, 16  ;;  %s372_s24 = scalar_lea.vmem %s311_s18, 32 }
  0x9e   :  { %p369_p10 = scmp.ne.s32.totalorder %s311_s18, %s368_s23  ;;  %p373_p11 = scmp.lt.s32.totalorder %s311_s18, %s311_s18 }
  0x9f   :  { %p374_p12 = scmp.lt.s32.totalorder %s372_s24, %s368_s23 }
  0xa1   :  { %p375_p13 = por %p374_p12, %p373_p11 }
  0xa3   :  { %p376_p0 = pnand %p375_p13, %p369_p10 }
  0xa5   :  { %379 = shalt.err (!%p376_p0)
}
  0xa6   :  { %313 = dma.vmem_to_hbm [thread:$0]  %s311_s18, 16, %s425_s2, [#allocation7]  }
  0xa7   :  { %390 = dma.done.wait [#allocation4], 16  }
  0xa8   :  { %391 = vsyncadd [#allocation4], 4294967280 }
  0xa9   :  { %392 = dma.done.wait [#allocation7], 16  }
  0xaa   :  { %393 = vsyncadd [#allocation7], 4294967280 }
  0xab   :  { %320 = vsyncpa [#allocation3], 1 }
  0xac   :  { %321 = vsyncpa [#allocation4], 1 }
  0xad   :  { %322 = vsyncpa [#allocation7], 1 }

</bundles_post_ra>
